<compile_context>
chip_gen: v6e
topology: v6e:2x2x1
jax: 0.10.0
libtpu: 0.0.40
codegen_flags: <defaults>
</compile_context>

<pallas_src>
import jax
import jax.numpy as jnp
from jax.experimental import pallas as pl
from jax.experimental.pallas import tpu as pltpu

_LANES = 128
_TARGET_BLOCK_BYTES = 4 << 20   # ~4 MiB per block (per buffer)
_VMEM_LIMIT_BYTES = 32 << 20    # raise v5e's 16 MiB default; == default on v6e/v7x


def _mish_kernel(x_ref, o_ref):
    x = x_ref[...]
    xf = x.astype(jnp.float32)
    # Fused tanh(softplus(x)):
    #   u = (1 + e^x)^2,  tanh(softplus(x)) = (u - 1) / (u + 1) = n / (n + 2)
    #   with n = e^x * (e^x + 2)   (cancellation-free form).
    # Clamp x at 20 before exp (matches torch softplus threshold=20); for
    # x > 20 the formula evaluates to exactly 1.0 in f32, same as tanh(x).
    # The clamp also keeps exp finite on the masked ragged-block garbage.
    e = jnp.exp(jnp.minimum(xf, 20.0))
    num = e * (e + 2.0)
    # Exact reciprocal (approx=False) keeps the 1e-5 self-test tolerance while
    # steering the divide onto the EUP seed path.
    t = num * pl.reciprocal(num + 2.0, approx=False)
    o_ref[...] = (xf * t).astype(o_ref.dtype)


def _mish_ref(x):
    """Pure-JAX reference (torch-style stable softplus + tanh)."""
    xf = x.astype(jnp.float32)
    sp = jnp.where(xf > 20.0, xf, jnp.log1p(jnp.exp(jnp.minimum(xf, 20.0))))
    return (xf * jnp.tanh(sp)).astype(x.dtype)


def _round_up(v, m):
    return ((v + m - 1) // m) * m


def _run_mish_2d(x2d, rows, dtype):
    itemsize = jnp.dtype(dtype).itemsize
    # Sublane alignment depends on dtype packing: 8 (f32), 16 (bf16), 32 (i8/fp8).
    sub_mult = 8 * max(1, 4 // max(1, itemsize))

    # Constant bytes per block: same ~4 MiB block for f32/bf16/int8.
    tile_rows = _TARGET_BLOCK_BYTES // (_LANES * itemsize)

    # Cap at the array extent, and — when there are enough rows — force at
    # least 2 grid steps so v7x megacore can shard the "parallel" axis across
    # both TensorCores (no effect on single-TC v5e/v6e).
    tr_cap = _round_up(rows, sub_mult)
    if rows > 2 * sub_mult:
        tr_cap = min(tr_cap, _round_up(pl.cdiv(rows, 2), sub_mult))
    tr = max(sub_mult, min(_round_up(tile_rows, sub_mult), tr_cap))
    grid = pl.cdiv(rows, tr)  # ragged last block is masked by Pallas

    n = rows * _LANES
    cost = pl.CostEstimate(
        flops=6 * n,
        transcendentals=n,
        bytes_accessed=2 * n * itemsize,
    )

    return pl.pallas_call(
        _mish_kernel,
        out_shape=jax.ShapeDtypeStruct((rows, _LANES), dtype),
        grid_spec=pltpu.PrefetchScalarGridSpec(
            num_scalar_prefetch=0,
            grid=(grid,),
            in_specs=[pl.BlockSpec((tr, _LANES), lambda i: (i, 0))],
            out_specs=pl.BlockSpec((tr, _LANES), lambda i: (i, 0)),
        ),
        compiler_params=pltpu.CompilerParams(
            dimension_semantics=("parallel",),
            vmem_limit_bytes=_VMEM_LIMIT_BYTES,
        ),
        cost_estimate=cost,
    )(x2d)


def mish(x):
    """Apply Mish elementwise to an array of any shape (HBM-bandwidth bound)."""
    orig_shape = x.shape
    n = x.size
    if n == 0:
        return x

    flat = jnp.ravel(x)  # free (metadata-only) for contiguous arrays

    if n % _LANES == 0:
        rows = n // _LANES
        out2d = _run_mish_2d(flat.reshape(rows, _LANES), rows, x.dtype)
        return out2d.reshape(orig_shape)

    # Rare path: element count not a multiple of 128 (uncommon for NCHW feature
    # maps). A single fused XLA elementwise pass costs exactly 1 read + 1 write
    # of HBM — the same traffic a masked in-kernel tail would, and far less than
    # the previous slice + kernel + concatenate route.
    # TODO(synk): fold ragged tails into the Pallas kernel with a masked store
    # if non-128-multiple sizes ever become a hot path.
    return _mish_ref(x)


if __name__ == "__main__":
    key = jax.random.PRNGKey(0)
    # NCHW input, small shape: batch=2, channels=4, spatial=16x16
    x = jax.random.normal(key, (2, 4, 16, 16), dtype=jnp.float32) * 3.0

    mish_jit = jax.jit(mish)
    y = jax.block_until_ready(mish_jit(x))

    y_ref = _mish_ref(x)
    assert y.shape == x.shape and y.dtype == x.dtype
    assert jnp.allclose(y, y_ref, atol=1e-5, rtol=1e-5)

    print("KERNEL_OK")
</pallas_src>

<mosaic_0001>
module attributes {stable_mosaic.version = 11 : i64} {
  func.func @_mish_kernel(%arg0: i32, %arg1: memref<16x128xf32, #tpu.memory_space<vmem>>, %arg2: memref<16x128xf32, #tpu.memory_space<vmem>>) attributes {dimension_semantics = [#tpu.dimension_semantics<parallel>], iteration_bounds = array<i64: 1>, scalar_prefetch = 0 : i64, scratch_operands = 0 : i64, tpu.core_type = #tpu.core_type<tc>, window_params = [{transform_indices = @transform_0, window_bounds = array<i64: 16, 128>}, {transform_indices = @transform_1, window_bounds = array<i64: 16, 128>}]} {
    %c0 = arith.constant 0 : index
    %c0_0 = arith.constant 0 : index
    %0 = vector.load %arg1[%c0, %c0_0] : memref<16x128xf32, #tpu.memory_space<vmem>>, vector<16x128xf32>
    %cst = arith.constant 2.000000e+01 : f32
    %1 = vector.broadcast %cst : f32 to vector<16x128xf32>
    %2 = arith.minimumf %0, %1 : vector<16x128xf32>
    %3 = math.exp %2 : vector<16x128xf32>
    %cst_1 = arith.constant 2.000000e+00 : f32
    %4 = vector.broadcast %cst_1 : f32 to vector<16x128xf32>
    %5 = arith.addf %3, %4 : vector<16x128xf32>
    %6 = arith.mulf %3, %5 : vector<16x128xf32>
    %cst_2 = arith.constant 2.000000e+00 : f32
    %7 = vector.broadcast %cst_2 : f32 to vector<16x128xf32>
    %8 = arith.addf %6, %7 : vector<16x128xf32>
    %9 = tpu.reciprocal %8 : vector<16x128xf32> -> vector<16x128xf32>
    %10 = arith.mulf %6, %9 : vector<16x128xf32>
    %11 = arith.mulf %0, %10 : vector<16x128xf32>
    %c0_3 = arith.constant 0 : index
    %c0_4 = arith.constant 0 : index
    %12 = vector.load %arg2[%c0_3, %c0_4] : memref<16x128xf32, #tpu.memory_space<vmem>>, vector<16x128xf32>
    tpu.vector_store %arg2[%c0_3, %c0_4], %11 {strides = array<i32>} : memref<16x128xf32, #tpu.memory_space<vmem>>, vector<16x128xf32>,
    return
  }
  func.func @transform_0(%arg0: i32) -> (i32, i32) {
    %c0_i32 = arith.constant 0 : i32
    %c0_i32_0 = arith.constant 0 : i32
    return %arg0, %c0_i32 : i32, i32
  }
  func.func @transform_1(%arg0: i32) -> (i32, i32) {
    %c0_i32 = arith.constant 0 : i32
    %c0_i32_0 = arith.constant 0 : i32
    return %arg0, %c0_i32 : i32, i32
  }
}

</mosaic_0001>

<bundles_post_ra>
// kernel: mish.1
= control target key start
LH: loop header
LB: loop body
LE: loop exit
PB: predicated region body
PF: predicated region fallthrough
CT: control target
= control target key end

     0   :  { %s64_s0 = inlined_call_operand.vmem [shape: f32[16,128], index: 0, kind: input, shape index: {}]   ;;  %s65_s1 = inlined_call_operand.vmem [shape: f32[16,128], index: 1, kind: output, shape index: {}]  }
   0x1   :  { %v8_v0 = vld [vmem:[%s64_s0] sm:$0xff]  ;;  %v9_v1 = vld [vmem:[%s64_s0 + $0x8] sm:$0xff] }
   0x2   :  { %v10_v2 = vmin.f32 %v8_v0, 20.0  ;;  %v11_v3 = vmin.f32 %v9_v1, 20.0 }
   0x4   :  { %v12_v4 = vmul.f32 1.442695, %v10_v2  ;;  %v14_v5 = vmul.f32 1.442695, %v11_v3 }
   0x6   :  { %34 = vpow2.f32 %v12_v4 }
   0x7   :  { %36 = vpow2.f32 %v14_v5 }
  0x13   :  { %v35_v6 = vpop.eup %34 }
  0x14   :  { %v37_v7 = vpop.eup %36  ;;  %v16_v8 = vadd.f32 2.0, %v35_v6 }
  0x15   :  { %v17_v9 = vadd.f32 2.0, %v37_v7 }
  0x16   :  { %v18_v10 = vmul.f32 %v35_v6, %v16_v8 }
  0x17   :  { %v19_v11 = vmul.f32 %v37_v7, %v17_v9 }
  0x18   :  { %v20_v12 = vadd.f32 2.0, %v18_v10 }
  0x19   :  { %v21_v13 = vadd.f32 2.0, %v19_v11 }
  0x1a   :  { %38 = vrcp.f32 %v20_v12 }
  0x1b   :  { %40 = vrcp.f32 %v21_v13 }
  0x27   :  { %v39_v14 = vpop.eup %38 }
  0x28   :  { %v41_v15 = vpop.eup %40  ;;  %v24_v16 = vmul.f32 %v39_v14, %v18_v10 }
  0x29   :  { %v25_v17 = vmul.f32 %v41_v15, %v19_v11 }
  0x2a   :  { %v26_v18 = vmul.f32 %v24_v16, %v8_v0 }
  0x2b   :  { %v27_v19 = vmul.f32 %v25_v17, %v9_v1 }
  0x2c   :  { %28 = vst [vmem:[%s65_s1] sm:$0xff] %v26_v18 }
  0x2d   :  { %29 = vst [vmem:[%s65_s1 + $0x8] sm:$0xff] %v27_v19 }

</bundles_post_ra>
